<compile_context>
chip_gen: v6e
topology: v6e:2x2x1
jax: 0.10.0
libtpu: 0.0.40
codegen_flags: <defaults>
</compile_context>

<pallas_src>
import functools

import jax
import jax.numpy as jnp
from jax import lax
from jax.experimental import pallas as pl
from jax.experimental.pallas import tpu as pltpu

_NEG = -1e30          # class-axis padding value -> exp(pad - max) == 0
_VMEM_BUDGET = 28 << 20    # working-set budget used to size tile_n
_VMEM_LIMIT = 48 << 20     # scoped-VMEM limit handed to the compiler


def _ce_kernel(logits_ref, labels_ref, nll_ref, pred_ref, *, n_total, tile_n):
    i = pl.program_id(0)

    x = logits_ref[...].astype(jnp.float32)                  # (tn, Cp)
    m = jnp.max(x, axis=1, keepdims=True)                    # (tn, 1)
    ex = jnp.exp(x - m)                                      # (tn, Cp)
    s = jnp.sum(ex, axis=1, keepdims=True)                   # (tn, 1)

    # Softmax prediction (F.softmax(logits, dim=1)).  Exact reciprocal keeps
    # the prediction within tight tolerance; the kernel is HBM-bound so the
    # approximate EUP reciprocal would not move wall-clock here.
    pred_ref[...] = (ex * pl.reciprocal(s, approx=False)).astype(pred_ref.dtype)

    # log-sum-exp per row
    lse = m + jnp.log(s)                                     # (tn, 1)

    # gather logit at the label index via an iota mask (no dynamic gather)
    lbl = labels_ref[...]                                    # (tn, 1) int32
    cls = lax.broadcasted_iota(jnp.int32, x.shape, 1)        # (tn, Cp)
    picked = jnp.sum(jnp.where(cls == lbl, x, 0.0), axis=1, keepdims=True)

    # mask out rows that are batch padding (global row index >= n_total)
    row = lax.broadcasted_iota(jnp.int32, (x.shape[0], 1), 0) + i * tile_n
    valid = (row < n_total).astype(jnp.float32)

    # per-row NLL partials; summed (f32) in the wrapper -> mean
    nll_ref[...] = (lse - picked) * valid


def _pick_tile_n(n, c_pad, itemsize):
    # per-row VMEM cost ~= 2x double-buffered logits-in + 2x pred-out
    #                      + ~3 f32 temporaries (x, ex, intermediates)
    per_row = c_pad * (2 * itemsize + 2 * itemsize + 3 * 4) + 64
    t = int(_VMEM_BUDGET // per_row)
    t = max(8, min(t, 1024))
    if t >= 16:
        t = (t // 16) * 16          # 16-row align (bf16 sublane packing)
    n_aligned = ((n + 15) // 16) * 16
    t = min(t, max(n_aligned, 8))
    t = max(8, (t // 8) * 8)
    return t


def cross_entropy_loss(logits, label_indexes, *, tile_n=None):
    """Returns (loss, prediction) matching CrossEntropyLoss.forward."""
    n, c = logits.shape
    itemsize = jnp.dtype(logits.dtype).itemsize

    # lane-dense class axis
    c_pad = ((c + 127) // 128) * 128
    if tile_n is None:
        tile_n = _pick_tile_n(n, c_pad, itemsize)
    n_pad = ((n + tile_n - 1) // tile_n) * tile_n
    num_blocks = n_pad // tile_n

    x = logits
    if c_pad != c:
        x = jnp.pad(x, ((0, 0), (0, c_pad - c)),
                    constant_values=jnp.asarray(_NEG, dtype=logits.dtype))
    if n_pad != n:
        x = jnp.pad(x, ((0, n_pad - n), (0, 0)))

    labels2d = label_indexes.reshape(n, 1).astype(jnp.int32)
    if n_pad != n:
        labels2d = jnp.pad(labels2d, ((0, n_pad - n), (0, 0)))

    kernel = functools.partial(_ce_kernel, n_total=n, tile_n=tile_n)

    nll_rows, pred_pad = pl.pallas_call(
        kernel,
        out_shape=(
            jax.ShapeDtypeStruct((n_pad, 1), jnp.float32),       # per-row NLL
            jax.ShapeDtypeStruct((n_pad, c_pad), logits.dtype),  # softmax pred
        ),
        grid_spec=pltpu.PrefetchScalarGridSpec(
            num_scalar_prefetch=0,
            grid=(num_blocks,),
            in_specs=[
                pl.BlockSpec((tile_n, c_pad), lambda i: (i, 0)),  # logits tile
                pl.BlockSpec((tile_n, 1), lambda i: (i, 0)),      # labels tile
            ],
            out_specs=(
                pl.BlockSpec((tile_n, 1), lambda i: (i, 0)),      # NLL rows
                pl.BlockSpec((tile_n, c_pad), lambda i: (i, 0)),  # pred tile
            ),
        ),
        compiler_params=pltpu.CompilerParams(
            dimension_semantics=("parallel",),   # batch tiles are independent
            vmem_limit_bytes=_VMEM_LIMIT,
        ),
    )(x, labels2d)

    loss = jnp.sum(nll_rows) / jnp.float32(n)    # mean reduction
    pred = pred_pad[:n, :c]
    return loss, pred


def _reference(logits, labels):
    x = logits.astype(jnp.float32)
    n = x.shape[0]
    lse = jax.scipy.special.logsumexp(x, axis=1)
    ref_loss = jnp.mean(lse - x[jnp.arange(n), labels])
    ref_pred = jax.nn.softmax(x, axis=1)
    return ref_loss, ref_pred


if __name__ == "__main__":
    key = jax.random.PRNGKey(0)
    k1, k2, k3, k4 = jax.random.split(key, 4)

    # case 1: small, lane-padded class axis (C=32 -> padded to 128)
    N, C = 16, 32
    logits = jax.random.normal(k1, (N, C), dtype=jnp.float32)
    labels = jax.random.randint(k2, (N,), 0, C, dtype=jnp.int32)
    loss, pred = cross_entropy_loss(logits, labels)
    jax.block_until_ready((loss, pred))
    ref_loss, ref_pred = _reference(logits, labels)
    assert jnp.allclose(loss, ref_loss, atol=1e-5, rtol=1e-5), (loss, ref_loss)
    assert jnp.allclose(pred, ref_pred, atol=1e-5, rtol=1e-5)

    # case 2: N not divisible by the tile, C not a multiple of 128
    N2, C2 = 13, 200
    logits2 = jax.random.normal(k3, (N2, C2), dtype=jnp.float32)
    labels2 = jax.random.randint(k4, (N2,), 0, C2, dtype=jnp.int32)
    loss2, pred2 = cross_entropy_loss(logits2, labels2)
    jax.block_until_ready((loss2, pred2))
    ref_loss2, ref_pred2 = _reference(logits2, labels2)
    assert jnp.allclose(loss2, ref_loss2, atol=1e-5, rtol=1e-5), (loss2, ref_loss2)
    assert jnp.allclose(pred2, ref_pred2, atol=1e-5, rtol=1e-5)

    print("KERNEL_OK")
</pallas_src>

<mosaic_0001>
module attributes {stable_mosaic.version = 11 : i64} {
  func.func @_ce_kernel(%arg0: i32, %arg1: memref<16x128xf32, #tpu.memory_space<vmem>>, %arg2: memref<16x1xi32, #tpu.memory_space<vmem>>, %arg3: memref<16x1xf32, #tpu.memory_space<vmem>>, %arg4: memref<16x128xf32, #tpu.memory_space<vmem>>) attributes {dimension_semantics = [#tpu.dimension_semantics<parallel>], iteration_bounds = array<i64: 1>, scalar_prefetch = 0 : i64, scratch_operands = 0 : i64, tpu.core_type = #tpu.core_type<tc>, window_params = [{transform_indices = @transform_0, window_bounds = array<i64: 16, 128>}, {transform_indices = @transform_1, window_bounds = array<i64: 16, 1>}, {transform_indices = @transform_2, window_bounds = array<i64: 16, 1>}, {transform_indices = @transform_3, window_bounds = array<i64: 16, 128>}]} {
    %c0 = arith.constant 0 : index
    %c0_0 = arith.constant 0 : index
    %0 = vector.load %arg1[%c0, %c0_0] : memref<16x128xf32, #tpu.memory_space<vmem>>, vector<16x128xf32>
    %cst = arith.constant dense<0xFF800000> : vector<16xf32>
    %1 = vector.multi_reduction <maximumf>, %0, %cst [1] : vector<16x128xf32> to vector<16xf32>
    %2 = vector.shape_cast %1 : vector<16xf32> to vector<16x1xf32>
    %3 = vector.broadcast %2 : vector<16x1xf32> to vector<16x128xf32>
    %4 = arith.subf %0, %3 : vector<16x128xf32>
    %5 = math.exp %4 : vector<16x128xf32>
    %cst_1 = arith.constant dense<0.000000e+00> : vector<16xf32>
    %6 = vector.multi_reduction <add>, %5, %cst_1 [1] : vector<16x128xf32> to vector<16xf32>
    %7 = vector.shape_cast %6 : vector<16xf32> to vector<16x1xf32>
    %8 = tpu.reciprocal %7 : vector<16x1xf32> -> vector<16x1xf32>
    %9 = vector.broadcast %8 : vector<16x1xf32> to vector<16x128xf32>
    %10 = arith.mulf %5, %9 : vector<16x128xf32>
    %c0_2 = arith.constant 0 : index
    %c0_3 = arith.constant 0 : index
    %11 = vector.load %arg4[%c0_2, %c0_3] : memref<16x128xf32, #tpu.memory_space<vmem>>, vector<16x128xf32>
    tpu.vector_store %arg4[%c0_2, %c0_3], %10 {strides = array<i32>} : memref<16x128xf32, #tpu.memory_space<vmem>>, vector<16x128xf32>,
    %12 = math.log %7 : vector<16x1xf32>
    %13 = arith.addf %2, %12 : vector<16x1xf32>
    %c0_4 = arith.constant 0 : index
    %c0_5 = arith.constant 0 : index
    %14 = vector.load %arg2[%c0_4, %c0_5] : memref<16x1xi32, #tpu.memory_space<vmem>>, vector<16x1xi32>
    %15 = tpu.iota {dimensions = array<i32: 1>} : vector<16x128xi32>
    %16 = vector.broadcast %14 : vector<16x1xi32> to vector<16x128xi32>
    %17 = arith.cmpi eq, %15, %16 : vector<16x128xi32>
    %cst_6 = arith.constant 0.000000e+00 : f32
    %18 = vector.broadcast %cst_6 : f32 to vector<16x128xf32>
    %19 = arith.select %17, %0, %18 : vector<16x128xi1>, vector<16x128xf32>
    %cst_7 = arith.constant dense<0.000000e+00> : vector<16xf32>
    %20 = vector.multi_reduction <add>, %19, %cst_7 [1] : vector<16x128xf32> to vector<16xf32>
    %21 = vector.shape_cast %20 : vector<16xf32> to vector<16x1xf32>
    %22 = tpu.iota {dimensions = array<i32: 0>} : vector<16x1xi32>
    %c16_i32 = arith.constant 16 : i32
    %23 = arith.muli %arg0, %c16_i32 : i32
    %24 = vector.broadcast %23 : i32 to vector<16x1xi32>
    %25 = arith.addi %22, %24 : vector<16x1xi32>
    %c16_i32_8 = arith.constant 16 : i32
    %26 = vector.broadcast %c16_i32_8 : i32 to vector<16x1xi32>
    %27 = arith.cmpi slt, %25, %26 : vector<16x1xi32>
    %28 = arith.extui %27 : vector<16x1xi1> to vector<16x1xi32>
    %29 = arith.sitofp %28 : vector<16x1xi32> to vector<16x1xf32>
    %30 = arith.subf %13, %21 : vector<16x1xf32>
    %31 = arith.mulf %30, %29 : vector<16x1xf32>
    %c0_9 = arith.constant 0 : index
    %c0_10 = arith.constant 0 : index
    %32 = vector.load %arg3[%c0_9, %c0_10] : memref<16x1xf32, #tpu.memory_space<vmem>>, vector<16x1xf32>
    tpu.vector_store %arg3[%c0_9, %c0_10], %31 {strides = array<i32>} : memref<16x1xf32, #tpu.memory_space<vmem>>, vector<16x1xf32>,
    return
  }
  func.func @transform_0(%arg0: i32) -> (i32, i32) {
    %c0_i32 = arith.constant 0 : i32
    %c0_i32_0 = arith.constant 0 : i32
    return %arg0, %c0_i32 : i32, i32
  }
  func.func @transform_1(%arg0: i32) -> (i32, i32) {
    %c0_i32 = arith.constant 0 : i32
    %c0_i32_0 = arith.constant 0 : i32
    return %arg0, %c0_i32 : i32, i32
  }
  func.func @transform_2(%arg0: i32) -> (i32, i32) {
    %c0_i32 = arith.constant 0 : i32
    %c0_i32_0 = arith.constant 0 : i32
    return %arg0, %c0_i32 : i32, i32
  }
  func.func @transform_3(%arg0: i32) -> (i32, i32) {
    %c0_i32 = arith.constant 0 : i32
    %c0_i32_0 = arith.constant 0 : i32
    return %arg0, %c0_i32 : i32, i32
  }
}

</mosaic_0001>

<bundles_post_ra>
// kernel: tpu_custom_call.1
= control target key start
LH: loop header
LB: loop body
LE: loop exit
PB: predicated region body
PF: predicated region fallthrough
CT: control target
= control target key end

     0   :  { %v140_v2 = vmov 0   ;;  %s187_s0 = inlined_call_operand.vmem [shape: f32[16,128], index: 0, kind: input, shape index: {}]   ;;  %s188_s1 = inlined_call_operand.vmem [shape: s32[16,1], index: 1, kind: input, shape index: {}]   ;;  %s189_s2 = inlined_call_operand.vmem [shape: f32[16,1], index: 2, kind: output, shape index: {0}]   ;;  %s190_s3 = inlined_call_operand.hbm [shape: f32[16,128], index: 3, kind: output, shape index: {1}]  }
   0x1   :  { %v14_v0 = vld [vmem:[%s187_s0] sm:$0xff]  ;;  %104 = vset.pattern.permute.xlu1 %v140_v2 }
   0x2   :  { %v42_v1 = vld [vmem:[%s188_s1] sm:$0xff]  ;;  %16 = vmax.xlane.f32.xlu0 %v14_v0 }
   0x3   :  { %9 = vsyncpa [#allocation3], 0  ;;  %v15_v3 = vld [vmem:[%s187_s0 + $0x8] sm:$0xff]  ;;  %47 = vperm.xlu1 %104, %v42_v1   ;;  %105 = vset.pattern.permute.xlu0 %v140_v2  ;;  %v44_v11 = vlaneseq  ;;  %s141_s0 = smov [#allocation2]   ;;  %vm77_vm2 = vcmask 7168  }
   0x4   :  { %v43_v4 = vld [vmem:[%s188_s1 + $0x8] sm:$0xff]  ;;  %s87_s1 = sshll.u32 %s141_s0, 4  ;;  %s88_s1 = int_to_ptr.vmem [resolvable:$true] %s87_s1 }
   0x5   :  { %v45_v13 = vand.u32 127, %v44_v11  ;;  %s118_s22 = scalar_lea.vmem %s88_s1, 256  ;;  %p123_p1 = scmp.lt.s32.totalorder %s88_s1, %s88_s1 }
   0x6   :  { %18 = vmax.xlane.f32.xlu0 %v15_v3  ;;  %p119_p0 = scmp.ne.s32.totalorder %s88_s1, %s118_s22  ;;  %p124_p2 = scmp.lt.s32.totalorder %s118_s22, %s118_s22 }
   0x7   :  { %50 = vperm.xlu1 %104, %v43_v4  }
   0x8   :  { %p125_p3 = por %p124_p2, %p123_p1 }
   0xa   :  { %p126_p4 = pnand %p125_p3, %p119_p0 }
  0x7e   :  { %v48_v12 = vpop.permute.xlu1 %47 }
  0x7f   :  { %vm52_vm0 = vcmp.eq.s32.totalorder %v45_v13, %v48_v12 }
  0x80   :  { %v54_v16 = vsel %vm52_vm0, %v14_v0, 0.0 }
  0x82   :  { %v51_v15 = vpop.permute.xlu1 %50 }
  0x83   :  { %vm53_vm1 = vcmp.eq.s32.totalorder %v45_v13, %v51_v15 }
  0x84   :  { %v55_v18 = vsel %vm53_vm1, %v15_v3, 0.0 }
  0x8b   :  { %v17_v5 = vpop.xlane.xlu0 %16 }
  0x8c   :  { %v20_v6 = vsub.f32 %v14_v0, %v17_v5 }
  0x8e   :  { %v22_v7 = vmul.f32 1.442695, %v20_v6 }
  0x8f   :  { %v19_v8 = vpop.xlane.xlu0 %18 }
  0x90   :  { %106 = vpow2.f32 %v22_v7  ;;  %v21_v9 = vsub.f32 %v15_v3, %v19_v8 }
  0x92   :  { %v24_v10 = vmul.f32 1.442695, %v21_v9 }
  0x94   :  { %108 = vpow2.f32 %v24_v10 }
  0x9d   :  { %v107_v14 = vpop.eup %106 }
  0x9e   :  { %26 = vadd.xlane.f32.xlu0 %v107_v14 }
  0xa1   :  { %v109_v17 = vpop.eup %108 }
  0xa2   :  { %28 = vadd.xlane.f32.xlu1 %v109_v17  ;;  %56 = vadd.xlane.f32.xlu0 %v54_v16 }
  0xa6   :  { %58 = vadd.xlane.f32.xlu0 %v55_v18 }
 0x127   :  { %v27_v19 = vpop.xlane.xlu0 %26 }
 0x128   :  { %110 = vrcp.f32 %v27_v19 }
 0x129   :  { %112 = vlog2.f32 %v27_v19 }
 0x12b   :  { %v29_v20 = vpop.xlane.xlu1 %28  ;;  %v57_v25 = vpop.xlane.xlu0 %56 }
 0x12c   :  { %114 = vrcp.f32 %v29_v20 }
 0x12d   :  { %116 = vlog2.f32 %v29_v20 }
 0x135   :  { %v111_v21 = vpop.eup %110 }
 0x136   :  { %v113_v22 = vpop.eup %112  ;;  %v32_v23 = vmul.f32 %v111_v21, %v107_v14 }
 0x137   :  { %v37_v24 = vmul.f32 0.6931472, %v113_v22 }
 0x138   :  { %34 = vst [vmem:[#allocation2] sm:$0xff] %v32_v23 }
 0x139   :  { %v115_v26 = vpop.eup %114  ;;  %v40_v27 = vadd.f32 %v37_v24, %v17_v5 }
 0x13a   :  { %v117_v28 = vpop.eup %116  ;;  %v33_v29 = vmul.f32 %v115_v26, %v109_v17 }
 0x13b   :  { %v39_v30 = vmul.f32 0.6931472, %v117_v28  ;;  %v73_v31 = vsub.f32 %v40_v27, %v57_v25 }
 0x13c   :  { %35 = vst [vmem:[#allocation2 + $0x8] sm:$0xff] %v33_v29 }
 0x13d   :  { %78 = vst.msk [vmem:[%s189_s2] sm:$0xff] %vm77_vm2, %v73_v31  ;;  %v41_v32 = vadd.f32 %v39_v30, %v19_v8 }
 0x13e   :  { %129 = shalt.err (!%p126_p4)
}
 0x13f   :  { %s142_s23 = smov 128   ;;  %s143_s24 = smov 8   ;;  %v59_v33 = vpop.xlane.xlu0 %58 }
 0x140   :  { %93 = dma.vmem_to_hbm [thread:$0]  %s88_s1, 256, %s190_s3, [#allocation3], %s142_s23, %s142_s23, %s143_s24   ;;  %v74_v34 = vsub.f32 %v41_v32, %v59_v33 }
 0x142   :  { %79 = vst.msk [vmem:[%s189_s2 + $0x8] sm:$0xff] %vm77_vm2, %v74_v34 }
 0x143   :  { %138 = dma.done.wait [#allocation3], 256  }
 0x144   :  { %139 = vsyncadd [#allocation3], 4294967040 }
 0x145   :  { %99 = vsyncpa [#allocation3], 1 }

</bundles_post_ra>
